<compile_context>
chip_gen: v7x
topology: tpu7x:2x2x1
jax: 0.10.0
libtpu: 0.0.40
codegen_flags: <defaults>
</compile_context>

<pallas_src>
import math

import jax
import jax.numpy as jnp
from jax.experimental import pallas as pl
from jax.experimental.pallas import tpu as pltpu

_N_FEAT = 8  # fcx in_features


def _baselearner_kernel(wx_ref, wy_ref, by_ref, x_ref, y_ref, o_ref):
    """One lane-dense batch tile.

    wx_ref: SMEM [8]    wy_ref: SMEM [1]    by_ref: SMEM [1]
    x_ref:  VMEM [8, TB]  (features on sublanes, batch on lanes)
    y_ref:  VMEM [1, TB]
    o_ref:  VMEM [1, TB]
    """
    # fcy: scalar affine on the VPU -> [1, TB]
    acc = y_ref[...] * wy_ref[0] + by_ref[0]
    # fcx: unrolled 8-term multiply-add over the 8 sublane rows (pure VPU).
    for k in range(_N_FEAT):
        acc = acc + wx_ref[k] * x_ref[pl.ds(k, 1), :]
    o_ref[...] = acc.astype(o_ref.dtype)


def _round_up(n, m):
    return ((n + m - 1) // m) * m


def baselearner_weather_forward(x, y, wx, wy, by, *, block_b=None):
    """Pallas implementation of BaseLearnerWeather.forward.

    x: [B, 8] or [8]   y: [B, 1] or [B]
    wx: [1, 8]         wy: [1, 1]         by: [1, 1] (or scalar)
    returns: [B, 1] float32
    """
    if x.ndim == 1:
        x = x.reshape(1, -1)
    B = x.shape[0]
    assert x.shape[1] == _N_FEAT
    x = x.astype(jnp.float32)
    y = jnp.asarray(y, jnp.float32).reshape(B, 1)

    if block_b is None:
        # Lane-dense batch tile: multiple of 128 lanes, capped so the
        # double-buffered x/y/out tiles stay ~10 MiB (fits v7x 64 MiB VMEM,
        # plenty of headroom on v5e/v6e's 128 MiB).
        block_b = min(_round_up(B, 128), 128 * 1024)
    assert block_b % 128 == 0
    Bp = _round_up(B, block_b)

    # Lane-dense layout: batch on the last (lane) axis, zero-padded to Bp.
    x_t = jnp.zeros((_N_FEAT, Bp), jnp.float32).at[:, :B].set(x.T)
    y_t = jnp.zeros((1, Bp), jnp.float32).at[:, :B].set(y.T)

    # Scalar parameters as flat 1-D SMEM-resident arrays.
    wx_s = jnp.asarray(wx, jnp.float32).reshape(_N_FEAT)
    wy_s = jnp.asarray(wy, jnp.float32).reshape(-1)[:1]
    by_s = jnp.asarray(by, jnp.float32).reshape(-1)[:1]

    grid = (Bp // block_b,)
    out_t = pl.pallas_call(
        _baselearner_kernel,
        out_shape=jax.ShapeDtypeStruct((1, Bp), jnp.float32),
        grid=grid,
        in_specs=[
            pl.BlockSpec(memory_space=pltpu.MemorySpace.SMEM),    # wx [8]
            pl.BlockSpec(memory_space=pltpu.MemorySpace.SMEM),    # wy [1]
            pl.BlockSpec(memory_space=pltpu.MemorySpace.SMEM),    # by [1]
            pl.BlockSpec((_N_FEAT, block_b), lambda i: (0, i)),   # x [8, TB]
            pl.BlockSpec((1, block_b), lambda i: (0, i)),         # y [1, TB]
        ],
        out_specs=pl.BlockSpec((1, block_b), lambda i: (0, i)),   # out [1, TB]
        compiler_params=pltpu.CompilerParams(
            dimension_semantics=("parallel",),
            vmem_limit_bytes=32 * 1024 * 1024,
        ),
    )(wx_s, wy_s, by_s, x_t, y_t)

    # Back to the PyTorch [B, 1] layout, dropping batch padding.
    return out_t[:, :B].T


def _kaiming_uniform(key, shape):
    # Matches nn.init.kaiming_uniform_ defaults: a=0, fan_in = shape[1],
    # gain = sqrt(2), bound = gain * sqrt(3 / fan_in).
    fan_in = shape[1]
    bound = math.sqrt(2.0) * math.sqrt(3.0 / fan_in)
    return jax.random.uniform(
        key, shape, dtype=jnp.float32, minval=-bound, maxval=bound
    )


if __name__ == "__main__":
    key = jax.random.PRNGKey(0)
    k_x, k_y, k_wx, k_wy = jax.random.split(key, 4)

    # Deterministic parameter init (shapes from the module __init__).
    wx = _kaiming_uniform(k_wx, (1, 8))         # fcx.weight
    wy = _kaiming_uniform(k_wy, (1, 1))         # fcy.weight
    by = jnp.zeros((1, 1), dtype=jnp.float32)   # fcy.bias

    # --- Small case, matching the module's typical usage (B = 8). ---
    B = 8
    x = jax.random.normal(k_x, (B, 8), dtype=jnp.float32)
    y = jax.random.normal(k_y, (B, 1), dtype=jnp.float32)

    out = baselearner_weather_forward(x, y, wx, wy, by)
    out = jax.block_until_ready(out)

    ref = x @ wx.T + (y @ wy.T + by[0, 0])
    assert out.shape == (B, 1)
    assert jnp.allclose(out, ref, atol=1e-5, rtol=1e-5)

    # --- Multi-tile case: exercises the batch grid + padding/masking path. ---
    B2 = 300  # not a multiple of 128 -> padded to 384, grid = (3,)
    k_x2, k_y2 = jax.random.split(k_x)
    x2 = jax.random.normal(k_x2, (B2, 8), dtype=jnp.float32)
    y2 = jax.random.normal(k_y2, (B2, 1), dtype=jnp.float32)

    out2 = baselearner_weather_forward(x2, y2, wx, wy, by, block_b=128)
    out2 = jax.block_until_ready(out2)

    ref2 = x2 @ wx.T + (y2 @ wy.T + by[0, 0])
    assert out2.shape == (B2, 1)
    assert jnp.allclose(out2, ref2, atol=1e-5, rtol=1e-5)

    print("KERNEL_OK")
</pallas_src>

<mosaic_0001>
module attributes {stable_mosaic.version = 11 : i64} {
  func.func @_baselearner_kernel(%arg0: i32, %arg1: memref<8xf32, #tpu.memory_space<smem>>, %arg2: memref<1xf32, #tpu.memory_space<smem>>, %arg3: memref<1xf32, #tpu.memory_space<smem>>, %arg4: memref<8x128xf32, #tpu.memory_space<vmem>>, %arg5: memref<1x128xf32, #tpu.memory_space<vmem>>, %arg6: memref<1x128xf32, #tpu.memory_space<vmem>>) attributes {dimension_semantics = [#tpu.dimension_semantics<parallel>], iteration_bounds = array<i64: 1>, scalar_prefetch = 0 : i64, scratch_operands = 0 : i64, tpu.core_type = #tpu.core_type<tc>, window_params = [{transform_indices = @transform_0, window_bounds = array<i64: 8>}, {transform_indices = @transform_1, window_bounds = array<i64: 1>}, {transform_indices = @transform_2, window_bounds = array<i64: 1>}, {transform_indices = @transform_3, window_bounds = array<i64: 8, 128>}, {transform_indices = @transform_4, window_bounds = array<i64: 1, 128>}, {transform_indices = @transform_5, window_bounds = array<i64: 1, 128>}]} {
    %c0 = arith.constant 0 : index
    %c0_0 = arith.constant 0 : index
    %0 = vector.load %arg5[%c0, %c0_0] : memref<1x128xf32, #tpu.memory_space<vmem>>, vector<1x128xf32>
    %c0_1 = arith.constant 0 : index
    %1 = memref.load %arg2[%c0_1] : memref<1xf32, #tpu.memory_space<smem>>
    %2 = vector.broadcast %1 : f32 to vector<1x128xf32>
    %3 = arith.mulf %0, %2 : vector<1x128xf32>
    %c0_2 = arith.constant 0 : index
    %4 = memref.load %arg3[%c0_2] : memref<1xf32, #tpu.memory_space<smem>>
    %5 = vector.broadcast %4 : f32 to vector<1x128xf32>
    %6 = arith.addf %3, %5 : vector<1x128xf32>
    %c0_3 = arith.constant 0 : index
    %7 = memref.load %arg1[%c0_3] : memref<8xf32, #tpu.memory_space<smem>>
    %c0_4 = arith.constant 0 : index
    %c0_5 = arith.constant 0 : index
    %8 = vector.load %arg4[%c0_4, %c0_5] : memref<8x128xf32, #tpu.memory_space<vmem>>, vector<1x128xf32>
    %9 = vector.broadcast %7 : f32 to vector<1x128xf32>
    %10 = arith.mulf %9, %8 : vector<1x128xf32>
    %11 = arith.addf %6, %10 : vector<1x128xf32>
    %c1 = arith.constant 1 : index
    %12 = memref.load %arg1[%c1] : memref<8xf32, #tpu.memory_space<smem>>
    %c1_6 = arith.constant 1 : index
    %c0_7 = arith.constant 0 : index
    %13 = vector.load %arg4[%c1_6, %c0_7] : memref<8x128xf32, #tpu.memory_space<vmem>>, vector<1x128xf32>
    %14 = vector.broadcast %12 : f32 to vector<1x128xf32>
    %15 = arith.mulf %14, %13 : vector<1x128xf32>
    %16 = arith.addf %11, %15 : vector<1x128xf32>
    %c2 = arith.constant 2 : index
    %17 = memref.load %arg1[%c2] : memref<8xf32, #tpu.memory_space<smem>>
    %c2_8 = arith.constant 2 : index
    %c0_9 = arith.constant 0 : index
    %18 = vector.load %arg4[%c2_8, %c0_9] : memref<8x128xf32, #tpu.memory_space<vmem>>, vector<1x128xf32>
    %19 = vector.broadcast %17 : f32 to vector<1x128xf32>
    %20 = arith.mulf %19, %18 : vector<1x128xf32>
    %21 = arith.addf %16, %20 : vector<1x128xf32>
    %c3 = arith.constant 3 : index
    %22 = memref.load %arg1[%c3] : memref<8xf32, #tpu.memory_space<smem>>
    %c3_10 = arith.constant 3 : index
    %c0_11 = arith.constant 0 : index
    %23 = vector.load %arg4[%c3_10, %c0_11] : memref<8x128xf32, #tpu.memory_space<vmem>>, vector<1x128xf32>
    %24 = vector.broadcast %22 : f32 to vector<1x128xf32>
    %25 = arith.mulf %24, %23 : vector<1x128xf32>
    %26 = arith.addf %21, %25 : vector<1x128xf32>
    %c4 = arith.constant 4 : index
    %27 = memref.load %arg1[%c4] : memref<8xf32, #tpu.memory_space<smem>>
    %c4_12 = arith.constant 4 : index
    %c0_13 = arith.constant 0 : index
    %28 = vector.load %arg4[%c4_12, %c0_13] : memref<8x128xf32, #tpu.memory_space<vmem>>, vector<1x128xf32>
    %29 = vector.broadcast %27 : f32 to vector<1x128xf32>
    %30 = arith.mulf %29, %28 : vector<1x128xf32>
    %31 = arith.addf %26, %30 : vector<1x128xf32>
    %c5 = arith.constant 5 : index
    %32 = memref.load %arg1[%c5] : memref<8xf32, #tpu.memory_space<smem>>
    %c5_14 = arith.constant 5 : index
    %c0_15 = arith.constant 0 : index
    %33 = vector.load %arg4[%c5_14, %c0_15] : memref<8x128xf32, #tpu.memory_space<vmem>>, vector<1x128xf32>
    %34 = vector.broadcast %32 : f32 to vector<1x128xf32>
    %35 = arith.mulf %34, %33 : vector<1x128xf32>
    %36 = arith.addf %31, %35 : vector<1x128xf32>
    %c6 = arith.constant 6 : index
    %37 = memref.load %arg1[%c6] : memref<8xf32, #tpu.memory_space<smem>>
    %c6_16 = arith.constant 6 : index
    %c0_17 = arith.constant 0 : index
    %38 = vector.load %arg4[%c6_16, %c0_17] : memref<8x128xf32, #tpu.memory_space<vmem>>, vector<1x128xf32>
    %39 = vector.broadcast %37 : f32 to vector<1x128xf32>
    %40 = arith.mulf %39, %38 : vector<1x128xf32>
    %41 = arith.addf %36, %40 : vector<1x128xf32>
    %c7 = arith.constant 7 : index
    %42 = memref.load %arg1[%c7] : memref<8xf32, #tpu.memory_space<smem>>
    %c7_18 = arith.constant 7 : index
    %c0_19 = arith.constant 0 : index
    %43 = vector.load %arg4[%c7_18, %c0_19] : memref<8x128xf32, #tpu.memory_space<vmem>>, vector<1x128xf32>
    %44 = vector.broadcast %42 : f32 to vector<1x128xf32>
    %45 = arith.mulf %44, %43 : vector<1x128xf32>
    %46 = arith.addf %41, %45 : vector<1x128xf32>
    %c0_20 = arith.constant 0 : index
    %c0_21 = arith.constant 0 : index
    %47 = vector.load %arg6[%c0_20, %c0_21] : memref<1x128xf32, #tpu.memory_space<vmem>>, vector<1x128xf32>
    tpu.vector_store %arg6[%c0_20, %c0_21], %46 {strides = array<i32>} : memref<1x128xf32, #tpu.memory_space<vmem>>, vector<1x128xf32>,
    return
  }
  func.func @transform_0(%arg0: i32) -> i32 {
    %c0_i32 = arith.constant 0 : i32
    %c0_i32_0 = arith.constant 0 : i32
    return %c0_i32 : i32
  }
  func.func @transform_1(%arg0: i32) -> i32 {
    %c0_i32 = arith.constant 0 : i32
    %c0_i32_0 = arith.constant 0 : i32
    return %c0_i32 : i32
  }
  func.func @transform_2(%arg0: i32) -> i32 {
    %c0_i32 = arith.constant 0 : i32
    %c0_i32_0 = arith.constant 0 : i32
    return %c0_i32 : i32
  }
  func.func @transform_3(%arg0: i32) -> (i32, i32) {
    %c0_i32 = arith.constant 0 : i32
    %c0_i32_0 = arith.constant 0 : i32
    return %c0_i32, %arg0 : i32, i32
  }
  func.func @transform_4(%arg0: i32) -> (i32, i32) {
    %c0_i32 = arith.constant 0 : i32
    %c0_i32_0 = arith.constant 0 : i32
    return %c0_i32, %arg0 : i32, i32
  }
  func.func @transform_5(%arg0: i32) -> (i32, i32) {
    %c0_i32 = arith.constant 0 : i32
    %c0_i32_0 = arith.constant 0 : i32
    return %c0_i32, %arg0 : i32, i32
  }
}

</mosaic_0001>

<bundles_post_ra>
// kernel: tpu_custom_call.1
= control target key start
LH: loop header
LB: loop body
LE: loop exit
PB: predicated region body
PF: predicated region fallthrough
CT: control target
= control target key end

     0   :  { %12 = vsyncpa [#allocation6], 0  ;;  %s226_s0 = inlined_call_operand.vmem [shape: f32[8], index: 0, kind: input, shape index: {}]   ;;  %s227_s1 = inlined_call_operand.<no memory space> [shape: f32[1], index: 1, kind: input, shape index: {}]   ;;  %s228_s2 = inlined_call_operand.<no memory space> [shape: f32[1], index: 2, kind: input, shape index: {}]   ;;  %s229_s3 = inlined_call_operand.vmem [shape: f32[8,128], index: 3, kind: input, shape index: {}]   ;;  %s230_s4 = inlined_call_operand.vmem [shape: f32[1,128], index: 4, kind: input, shape index: {}]   ;;  %s231_s5 = inlined_call_operand.hbm [shape: f32[1,128], index: 5, kind: output, shape index: {}]  }
   0x1   :  { %13 = vsyncpa [#allocation5], 0  ;;  %s20_s20 = sshll.u32 %s226_s0, 4  ;;  %s21_s20 = int_to_ptr.vmem [resolvable:$true] %s20_s20 }
   0x2   :  { %s108_s21 = scalar_lea.vmem %s21_s20, 16  ;;  %p113_p1 = scmp.lt.s32.totalorder %s21_s20, %s21_s20 }
   0x3   :  { %p109_p0 = scmp.ne.s32.totalorder %s21_s20, %s108_s21  ;;  %p114_p2 = scmp.lt.s32.totalorder %s108_s21, %s108_s21 }
   0x5   :  { %p115_p3 = por %p114_p2, %p113_p1 }
   0x7   :  { %p116_p4 = pnand %p115_p3, %p109_p0 }
   0x9   :  { %119 = shalt.err (!%p116_p4)
}
   0xa   :  { %s146_s22 = smov [#allocation4]  }
   0xb   :  { %23 = dma.vmem_to_smem %s21_s20, 16, %s146_s22, [#allocation6]  }
   0xc   :  { %142 = dma.done.wait [#allocation6], 16  }
   0xd   :  { %143 = vsyncadd [#allocation6], 4294967280 }
   0xe   :  { %35 = sfence }
   0xf   :  { %v36_v0 = vld [vmem:[%s230_s4] sm:$0x1]  ;;  %v38_v1 = vstv %s227_s1  ;;  %s43_s0 = sld [smem:[#allocation4]]  ;;  %s99_s27 = sld [smem:[#allocation4 + $0x1]]  ;;  %v41_v3 = vstv %s228_s2  ;;  %v49_v6 = vld [vmem:[%s229_s3 + $0x1] sm:$0x1] }
  0x10   :  { %v39_v2 = vmul.f32 %v38_v1, %v36_v0  ;;  %s100_s28 = sld [smem:[#allocation4 + $0x2]]  ;;  %s101_s6 = sld [smem:[#allocation4 + $0x3]]  ;;  %v44_v4 = vld [vmem:[%s229_s3] sm:$0x1]  ;;  %v54_v8 = vld [vmem:[%s229_s3 + $0x2] sm:$0x1] }
  0x11   :  { %s102_s7 = sld [smem:[#allocation4 + $0x4]]  ;;  %s103_s10 = sld [smem:[#allocation4 + $0x5]]  ;;  %v59_v13 = vld [vmem:[%s229_s3 + $0x3] sm:$0x1]  ;;  %v64_v17 = vld [vmem:[%s229_s3 + $0x4] sm:$0x1] }
  0x12   :  { %v42_v5 = vadd.f32 %v41_v3, %v39_v2  ;;  %s104_s13 = sld [smem:[#allocation4 + $0x6]]  ;;  %s105_s15 = sld [smem:[#allocation4 + $0x7]]  ;;  %v69_v21 = vld [vmem:[%s229_s3 + $0x5] sm:$0x1]  ;;  %v74_v25 = vld [vmem:[%s229_s3 + $0x6] sm:$0x1] }
  0x13   :  { %v79_v29 = vld [vmem:[%s229_s3 + $0x7] sm:$0x1]  ;;  %s147_s24 = smov [#allocation7]  }
  0x14   :  { %s90_s25 = sshll.u32 %s147_s24, 4  ;;  %s91_s25 = int_to_ptr.vmem [resolvable:$true] %s90_s25 }
  0x15   :  { %v45_v7 = vstv %s43_s0  ;;  %v50_v10 = vstv %s99_s27  ;;  %s120_s26 = scalar_lea.vmem %s91_s25, 16  ;;  %s124_s0 = scalar_lea.vmem %s91_s25, 32 }
  0x16   :  { %v46_v9 = vmul.f32 %v45_v7, %v44_v4  ;;  %v55_v11 = vstv %s100_s28  ;;  %v51_v12 = vmul.f32 %v50_v10, %v49_v6  ;;  %v60_v14 = vstv %s101_s6  ;;  %p121_p5 = scmp.ne.s32.totalorder %s91_s25, %s120_s26  ;;  %p125_p6 = scmp.lt.s32.totalorder %s91_s25, %s91_s25 }
  0x17   :  { %v56_v16 = vmul.f32 %v55_v11, %v54_v8  ;;  %v65_v18 = vstv %s102_s7  ;;  %v61_v20 = vmul.f32 %v60_v14, %v59_v13  ;;  %v70_v22 = vstv %s103_s10  ;;  %p126_p7 = scmp.lt.s32.totalorder %s124_s0, %s120_s26 }
  0x18   :  { %v47_v15 = vadd.f32 %v46_v9, %v42_v5  ;;  %v66_v24 = vmul.f32 %v65_v18, %v64_v17  ;;  %v75_v26 = vstv %s104_s13  ;;  %v71_v28 = vmul.f32 %v70_v22, %v69_v21 }
  0x19   :  { %v80_v30 = vstv %s105_s15  ;;  %v76_v32 = vmul.f32 %v75_v26, %v74_v25  ;;  %p127_p8 = por %p126_p7, %p125_p6 }
  0x1a   :  { %v52_v19 = vadd.f32 %v51_v12, %v47_v15  ;;  %v81_v34 = vmul.f32 %v80_v30, %v79_v29 }
  0x1b   :  { %p128_p9 = pnand %p127_p8, %p121_p5 }
  0x1c   :  { %v57_v23 = vadd.f32 %v56_v16, %v52_v19 }
  0x1e   :  { %v62_v27 = vadd.f32 %v61_v20, %v57_v23 }
  0x20   :  { %v67_v31 = vadd.f32 %v66_v24, %v62_v27 }
  0x22   :  { %v72_v33 = vadd.f32 %v71_v28, %v67_v31 }
  0x24   :  { %v77_v35 = vadd.f32 %v76_v32, %v72_v33 }
  0x26   :  { %v82_v36 = vadd.f32 %v81_v34, %v77_v35 }
  0x28   :  { %83 = vst [vmem:[#allocation7] sm:$0x1] %v82_v36 }
  0x29   :  { %131 = shalt.err (!%p128_p9)
}
  0x2a   :  { %s132_s28 = scalar_lea.hbm %s231_s5, 16 }
  0x2b   :  { %p133_p10 = scmp.ne.s32.totalorder %s231_s5, %s132_s28  ;;  %p136_p11 = scmp.lt.u32.totalorder %s132_s28, %s231_s5 }
  0x2d   :  { %p138_p12 = pnand %p136_p11, %p133_p10 }
  0x2f   :  { %141 = shalt.err (!%p138_p12)
}
  0x30   :  { %93 = dma.vmem_to_hbm [thread:$0]  %s91_s25, 16, %s231_s5, [#allocation5]  }
  0x31   :  { %144 = dma.done.wait [#allocation5], 16  }
  0x32   :  { %145 = vsyncadd [#allocation5], 4294967280 }
  0x33   :  { %97 = vsyncpa [#allocation5], 1 }
  0x34   :  { %98 = vsyncpa [#allocation6], 1 }

</bundles_post_ra>
